<compile_context>
chip_gen: v7x
topology: tpu7x:2x2x1
jax: 0.10.0
libtpu: 0.0.40
codegen_flags: <defaults>
</compile_context>

<pallas_src>
import math

import jax
import jax.numpy as jnp
from jax.experimental import pallas as pl
from jax.experimental.pallas import tpu as pltpu


def _avg_halves_kernel(x_ref, o_ref):
    """x_ref: (2, TILE_R, TILE_C) fused tile holding matching rows of both halves."""
    a = x_ref[0]   # per-half indexing: one (8,128)-tile pair live per VALU op
    b = x_ref[1]
    # a*0.5 + b*0.5 (not (a+b)*0.5): cannot overflow near dtype max; the extra
    # VPU mul is fully hidden under the HBM memory bound.
    o_ref[...] = (a * 0.5 + b * 0.5).astype(o_ref.dtype)


def _round_up(n: int, m: int) -> int:
    return (n + m - 1) // m * m


def _derive_defaults():
    """(target_block_bytes, vmem_limit_bytes) per TPU generation."""
    try:
        vmem_cap = int(pltpu.get_tpu_info().vmem_capacity_bytes)
    except Exception:
        return 4 << 20, 32 << 20          # unknown part: proven-safe sizing
    if vmem_cap >= (96 << 20):            # v5e / v6e: 128 MiB physical VMEM
        return 8 << 20, 64 << 20
    return 6 << 20, 48 << 20              # v7x: 64 MiB physical per TensorCore


def _pick_lane_width(n_elems: int):
    """Largest 'nice' lane width (multiple of 128) that divides the slab size."""
    for c in (1024, 512, 256, 128):
        if n_elems % c == 0:
            return c
    return None


def reversible_output_adapter(
    x: jax.Array,
    split_dim: int = 0,
    *,
    target_block_bytes: int | None = None,   # per output block
    vmem_limit_bytes: int | None = None,
    input_buffering: int = 2,
    output_buffering: int = 2,
    core_parallel: bool = False,             # v7x: shard row axis across both TCs
) -> jax.Array:
    """Elementwise mean of the two halves of `x` along split_dim (=0)."""
    assert split_dim == 0, "kernel implemented for split_dim=0 (module default)"
    assert x.ndim >= 2, "expected at least (2*B, ..., D)"
    assert jnp.issubdtype(x.dtype, jnp.floating), (
        "mean-of-halves kernel only supports floating dtypes")
    lead = x.shape[0]
    assert lead >= 2 and lead % 2 == 0, "leading dim must be even (>=2) to chunk into 2"

    tb_default, vl_default = _derive_defaults()
    if target_block_bytes is None:
        target_block_bytes = tb_default
    if vmem_limit_bytes is None:
        vmem_limit_bytes = vl_default

    out_shape = (lead // 2,) + x.shape[1:]
    itemsize = jnp.dtype(x.dtype).itemsize
    n_half = math.prod(out_shape)                 # elements per half

    # Decouple lane width from the model dim: each half is a contiguous slab,
    # so reshape it (for free) to (R, C) with C a large multiple of 128 when
    # the slab size allows; otherwise keep the natural (rows, D) layout.
    C = _pick_lane_width(n_half)
    if C is None:
        C = x.shape[-1]
    R = n_half // C
    x2 = x.reshape(2, R, C)                       # contiguous slabs -> free reshape

    row_unit = 8 * max(1, 4 // itemsize)          # packed-sublane height: 8/16/32

    # Explicit VMEM accounting: live bytes ~= (2*in_buf + out_buf) * block.
    live_mult = 2 * max(1, input_buffering) + max(1, output_buffering)
    usable = max(vmem_limit_bytes - (1 << 20), vmem_limit_bytes // 2)
    block_budget = max(min(target_block_bytes, usable // live_mult),
                       row_unit * min(C, 128) * itemsize)

    # Lane tile: prefer the full lane extent; only tile lanes (multiples of
    # 128) if one row_unit-row stripe overshoots the block budget.
    if C <= 128 or row_unit * C * itemsize <= block_budget:
        tile_c = int(C)
    else:
        lanes = (block_budget // (row_unit * itemsize)) // 128 * 128
        tile_c = int(min(C, max(128, lanes)))

    rows_fit = (block_budget // (tile_c * itemsize)) // row_unit * row_unit
    rows_fit = max(row_unit, rows_fit)
    tile_r = int(R) if R <= rows_fit else int(rows_fit)

    # Keep >= 4 total grid steps whenever the row extent allows it: both v7x
    # TensorCores get work and DMA/compute/writeback overlap is restored
    # (a one-step grid has neither).
    lane_steps = pl.cdiv(C, tile_c)
    if pl.cdiv(R, tile_r) * lane_steps < 4 and R > row_unit:
        want_rows = -(-4 // lane_steps)                      # ceil
        cap = _round_up(-(-R // want_rows), row_unit)        # ceil then round
        tile_r = max(row_unit, min(tile_r, cap))

    grid = (pl.cdiv(R, tile_r), pl.cdiv(C, tile_c))

    in_kw, out_kw = {}, {}
    if input_buffering != 2:
        in_kw["pipeline_mode"] = pl.Buffered(input_buffering)
    if output_buffering != 2:
        out_kw["pipeline_mode"] = pl.Buffered(output_buffering)

    # Single fused input stream: both halves arrive in one block per step.
    in_spec = pl.BlockSpec((2, tile_r, tile_c), lambda r, c: (0, r, c), **in_kw)
    out_spec = pl.BlockSpec((tile_r, tile_c), lambda r, c: (r, c), **out_kw)

    row_sem = pltpu.CORE_PARALLEL if core_parallel else pltpu.PARALLEL
    out_flat = pl.pallas_call(
        _avg_halves_kernel,
        out_shape=jax.ShapeDtypeStruct((R, C), x.dtype),
        grid=grid,
        in_specs=[in_spec],
        out_specs=out_spec,
        compiler_params=pltpu.CompilerParams(
            dimension_semantics=(row_sem, pltpu.PARALLEL),
            vmem_limit_bytes=vmem_limit_bytes,
        ),
    )(x2)
    return out_flat.reshape(out_shape)


if __name__ == "__main__":
    key = jax.random.PRNGKey(0)
    k1, k2, k3, k4 = jax.random.split(key, 4)

    def ref_fn(v):
        # Reference: stack(chunk(2, dim=0)).mean(0)
        return jnp.stack(jnp.split(v, 2, axis=0)).mean(axis=0)

    # (1) f32, lane-dense hidden: slab flattens to C=1024, single grid step.
    x1 = jax.random.normal(k1, (4, 8, 128), dtype=jnp.float32)
    o1 = jax.block_until_ready(reversible_output_adapter(x1))
    assert o1.shape == (2, 8, 128), o1.shape
    assert jnp.allclose(o1, ref_fn(x1), atol=1e-6, rtol=1e-6)

    # (2) bf16 path: native-dtype math in the kernel (no f32 upcast).
    x2 = jax.random.normal(k2, (4, 32, 256), dtype=jnp.bfloat16)
    o2 = jax.block_until_ready(reversible_output_adapter(x2))
    assert o2.dtype == jnp.bfloat16 and o2.shape == (2, 32, 256)
    assert jnp.allclose(o2.astype(jnp.float32),
                        ref_fn(x2.astype(jnp.float32)), atol=2e-2, rtol=2e-2)

    # (3) Tiny block budget -> multi-step (row, lane) grid, exercising lane
    #     tiling, pipelining and the "parallel" axes.
    x3 = jax.random.normal(k3, (4, 64, 128), dtype=jnp.float32)
    o3 = jax.block_until_ready(
        reversible_output_adapter(x3, target_block_bytes=16 * 128 * 4))
    assert o3.shape == (2, 64, 128)
    assert jnp.allclose(o3, ref_fn(x3), atol=1e-6, rtol=1e-6)

    # (4) Awkward hidden dim (not a multiple of 128): the slab still flattens
    #     to a 256-wide lane layout so stores remain unmasked.
    x4 = jax.random.normal(k4, (4, 12, 96), dtype=jnp.float32)
    o4 = jax.block_until_ready(reversible_output_adapter(x4))
    assert o4.shape == (2, 12, 96)
    assert jnp.allclose(o4, ref_fn(x4), atol=1e-6, rtol=1e-6)

    print("KERNEL_OK")
</pallas_src>

<mosaic_0001>
module attributes {stable_mosaic.version = 11 : i64} {
  func.func @_avg_halves_kernel(%arg0: i32, %arg1: i32, %arg2: memref<2x2x1024xf32, #tpu.memory_space<vmem>>, %arg3: memref<2x1024xf32, #tpu.memory_space<vmem>>) attributes {dimension_semantics = [#tpu.dimension_semantics<parallel>, #tpu.dimension_semantics<parallel>], iteration_bounds = array<i64: 1, 1>, scalar_prefetch = 0 : i64, scratch_operands = 0 : i64, tpu.core_type = #tpu.core_type<tc>, window_params = [{transform_indices = @transform_0, window_bounds = array<i64: 2, 2, 1024>}, {transform_indices = @transform_1, window_bounds = array<i64: 2, 1024>}]} {
    %c0 = arith.constant 0 : index
    %c0_0 = arith.constant 0 : index
    %c0_1 = arith.constant 0 : index
    %0 = vector.load %arg2[%c0, %c0_0, %c0_1] : memref<2x2x1024xf32, #tpu.memory_space<vmem>>, vector<1x2x1024xf32>
    %1 = vector.shape_cast %0 : vector<1x2x1024xf32> to vector<2x1024xf32>
    %c1 = arith.constant 1 : index
    %c0_2 = arith.constant 0 : index
    %c0_3 = arith.constant 0 : index
    %2 = vector.load %arg2[%c1, %c0_2, %c0_3] : memref<2x2x1024xf32, #tpu.memory_space<vmem>>, vector<1x2x1024xf32>
    %3 = vector.shape_cast %2 : vector<1x2x1024xf32> to vector<2x1024xf32>
    %cst = arith.constant 5.000000e-01 : f32
    %4 = vector.broadcast %cst : f32 to vector<2x1024xf32>
    %5 = arith.mulf %1, %4 : vector<2x1024xf32>
    %cst_4 = arith.constant 5.000000e-01 : f32
    %6 = vector.broadcast %cst_4 : f32 to vector<2x1024xf32>
    %7 = arith.mulf %3, %6 : vector<2x1024xf32>
    %8 = arith.addf %5, %7 : vector<2x1024xf32>
    %c0_5 = arith.constant 0 : index
    %c0_6 = arith.constant 0 : index
    %9 = vector.load %arg3[%c0_5, %c0_6] : memref<2x1024xf32, #tpu.memory_space<vmem>>, vector<2x1024xf32>
    tpu.vector_store %arg3[%c0_5, %c0_6], %8 {strides = array<i32>} : memref<2x1024xf32, #tpu.memory_space<vmem>>, vector<2x1024xf32>,
    return
  }
  func.func @transform_0(%arg0: i32, %arg1: i32) -> (i32, i32, i32) {
    %c0_i32 = arith.constant 0 : i32
    %c0_i32_0 = arith.constant 0 : i32
    return %c0_i32, %arg0, %arg1 : i32, i32, i32
  }
  func.func @transform_1(%arg0: i32, %arg1: i32) -> (i32, i32) {
    %c0_i32 = arith.constant 0 : i32
    return %arg0, %arg1 : i32, i32
  }
}

</mosaic_0001>

<bundles_post_ra>
// kernel: tpu_custom_call.1
= control target key start
LH: loop header
LB: loop body
LE: loop exit
PB: predicated region body
PF: predicated region fallthrough
CT: control target
= control target key end

     0   :  { %6 = vsyncpa [#allocation3], 0  ;;  %s141_s0 = inlined_call_operand.hbm [shape: f32[2,2,1024], index: 0, kind: input, shape index: {}]   ;;  %s142_s1 = inlined_call_operand.hbm [shape: f32[2,1024], index: 1, kind: output, shape index: {}]  }
   0x1   :  { %7 = vsyncpa [#allocation4], 0  ;;  %s103_s6 = smov [#allocation2]   ;;  %s55_s10 = scalar_lea.hbm %s141_s0, 512 }
   0x2   :  { %s13_s7 = sshll.u32 %s103_s6, 4  ;;  %p56_p0 = scmp.ne.s32.totalorder %s141_s0, %s55_s10  ;;  %s14_s7 = int_to_ptr.vmem [resolvable:$true] %s13_s7 }
   0x3   :  { %p59_p1 = scmp.lt.u32.totalorder %s55_s10, %s141_s0 }
   0x5   :  { %p61_p2 = pnand %p59_p1, %p56_p0 }
   0x7   :  { %64 = shalt.err (!%p61_p2)
}
   0x8   :  { %s65_s15 = scalar_lea.vmem %s14_s7, 512  ;;  %p70_p4 = scmp.lt.s32.totalorder %s14_s7, %s14_s7 }
   0x9   :  { %p66_p3 = scmp.ne.s32.totalorder %s14_s7, %s65_s15  ;;  %p71_p5 = scmp.lt.s32.totalorder %s65_s15, %s65_s15 }
   0xb   :  { %p72_p6 = por %p71_p5, %p70_p4 }
   0xd   :  { %p73_p7 = pnand %p72_p6, %p66_p3 }
   0xf   :  { %76 = shalt.err (!%p73_p7)
}
  0x10   :  { %s104_s16 = smov 256   ;;  %s105_s17 = smov 16  }
  0x11   :  { %19 = dma.hbm_to_vmem [thread:$0]  %s141_s0, 512, %s14_s7, [#allocation3], %s104_s16, %s104_s16, %s105_s17  }
  0x12   :  { %99 = dma.done.wait [#allocation3], 512  }
  0x13   :  { %100 = vsyncadd [#allocation3], 4294966784  ;;  %v23_v0 = vld [vmem:[#allocation2] sm:$0xff]  ;;  %v26_v1 = vld [vmem:[#allocation2 + $0x10] sm:$0xff]  ;;  %s106_s20 = smov [#allocation5]  }
  0x14   :  { %v24_v2 = vld [vmem:[#allocation2 + $0x8] sm:$0xff]  ;;  %v28_v3 = vmul.f32 0.5, %v23_v0  ;;  %v30_v4 = vmul.f32 0.5, %v26_v1  ;;  %v27_v5 = vld [vmem:[#allocation2 + $0x18] sm:$0xff]  ;;  %s42_s21 = sshll.u32 %s106_s20, 4  ;;  %s43_s21 = int_to_ptr.vmem [resolvable:$true] %s42_s21 }
  0x15   :  { %v29_v6 = vmul.f32 0.5, %v24_v2  ;;  %v31_v7 = vmul.f32 0.5, %v27_v5  ;;  %s77_s22 = scalar_lea.vmem %s43_s21, 256  ;;  %p82_p9 = scmp.lt.s32.totalorder %s43_s21, %s43_s21 }
  0x16   :  { %v32_v8 = vadd.f32 %v30_v4, %v28_v3  ;;  %p78_p8 = scmp.ne.s32.totalorder %s43_s21, %s77_s22  ;;  %p83_p10 = scmp.lt.s32.totalorder %s77_s22, %s77_s22 }
  0x17   :  { %v33_v9 = vadd.f32 %v31_v7, %v29_v6 }
  0x18   :  { %34 = vst [vmem:[#allocation5] sm:$0xff] %v32_v8  ;;  %p84_p11 = por %p83_p10, %p82_p9 }
  0x19   :  { %35 = vst [vmem:[#allocation5 + $0x8] sm:$0xff] %v33_v9 }
  0x1a   :  { %p85_p12 = pnand %p84_p11, %p78_p8 }
  0x1c   :  { %88 = shalt.err (!%p85_p12)
}
  0x1d   :  { %s89_s24 = scalar_lea.hbm %s142_s1, 256 }
  0x1e   :  { %p90_p13 = scmp.ne.s32.totalorder %s142_s1, %s89_s24  ;;  %p93_p0 = scmp.lt.u32.totalorder %s89_s24, %s142_s1 }
  0x20   :  { %p95_p1 = pnand %p93_p0, %p90_p13 }
  0x22   :  { %98 = shalt.err (!%p95_p1)
}
  0x23   :  { %45 = dma.vmem_to_hbm [thread:$0]  %s43_s21, 256, %s142_s1, [#allocation4]  }
  0x24   :  { %101 = dma.done.wait [#allocation4], 256  }
  0x25   :  { %102 = vsyncadd [#allocation4], 4294967040 }
  0x26   :  { %49 = vsyncpa [#allocation3], 1 }
  0x27   :  { %50 = vsyncpa [#allocation4], 1 }

</bundles_post_ra>
